<compile_context>
chip_gen: v7x
topology: tpu7x:2x2x1
jax: 0.10.0
libtpu: 0.0.40
codegen_flags: <defaults>
</compile_context>

<pallas_src>
import math
from functools import partial

import jax
import jax.numpy as jnp
from jax.experimental import pallas as pl
from jax.experimental.pallas import tpu as pltpu

# -----------------------------------------------------------------------------
# scaled-down configuration (shapes consistent with the module's defaults)
# -----------------------------------------------------------------------------
B = 2              # batch
NV = 24            # vertices per mesh
NF = 16            # faces per mesh
NVF = 3            # vertices per face
PADSIZE = 32       # self.paddingsize (22500 in the module)
ENC_LAYERS = 2     # encoder_layer (6 in the module)
HIDDEN = 64        # hidden_size (576 in the module)
NHEAD = 4
DFF = 128          # dim_feedforward (256 in the module)
DEC_OUTDIM = 4     # decoder_outdim (12 in the module)
C2 = DEC_OUTDIM * 8                    # the "96" channel count of decode
H0, W0 = 4, 8                          # the "45, 90" base grid, scaled down
LP = PADSIZE // (2 ** ENC_LAYERS)      # seq length after transformer pooling

NUM_DISC_COORS = 512
NUM_DISC_ANGLE = 128
NUM_DISC_AREA = 128
NUM_DISC_NORMAL = 128
NUM_DISC_EMNOANGLE = 128
NUM_DISC_EMANGLE = 128
NUM_DISC_EMFREQ = 512

DIM_COOR = 8
DIM_ANGLE = 4
DIM_AREA = 4
DIM_NORMAL = 8
DIM_EMNOANGLE = 4
DIM_EMANGLE = 8
DIM_EMFREQ = 4

FEAT_DIM = (9 * DIM_COOR + 3 * DIM_ANGLE + DIM_AREA + 3 * DIM_NORMAL
            + DIM_EMNOANGLE + 3 * DIM_EMANGLE + DIM_EMFREQ + 1)   # = 145

# scoped-VMEM limit: above the 32 MiB default, below v7x's 64 MiB physical.
VMEM_LIMIT = 48 * 1024 * 1024


def _round_up(x, m):
    return (x + m - 1) // m * m


def _pick_tile(n, cands=(512, 256, 128)):
    for c in cands:
        if n % c == 0:
            return c
    return n


def _maybe_pad2d(x, rows, cols):
    r, c = x.shape
    if r == rows and c == cols:
        return x                       # skip the extra HBM copy when padding is a no-op
    return jnp.pad(x, ((0, rows - r), (0, cols - c)))


def _cparams(sem):
    return pltpu.CompilerParams(dimension_semantics=sem,
                                vmem_limit_bytes=VMEM_LIMIT)


# -----------------------------------------------------------------------------
# generic row-tiled matmul kernels (encoder / fc path)
# -----------------------------------------------------------------------------
def _mm_kernel(x_ref, w_ref, b_ref, o_ref, *, act):
    """out = act(x @ w + b); bf16 operands, f32 accumulation."""
    acc = jnp.dot(x_ref[...], w_ref[...], preferred_element_type=jnp.float32)
    acc = acc + b_ref[...]
    if act == "silu":
        acc = acc * jax.nn.sigmoid(acc)
    o_ref[...] = acc.astype(o_ref.dtype)


def _mm_ln_kernel(x_ref, w_ref, b_ref, g_ref, beta_ref, r_ref, o_ref, *,
                  true_m, eps):
    """out = LayerNorm(x @ w + b + residual); padded columns are exactly zero.
    Centered, column-masked variance (avoids the E[x^2]-mu^2 cancellation)."""
    acc = jnp.dot(x_ref[...], w_ref[...], preferred_element_type=jnp.float32)
    acc = acc + b_ref[...] + r_ref[...].astype(jnp.float32)
    inv_m = 1.0 / float(true_m)
    mu = jnp.sum(acc, axis=-1, keepdims=True) * inv_m
    cols = jax.lax.broadcasted_iota(jnp.int32, acc.shape, 1)
    cen = jnp.where(cols < true_m, acc - mu, 0.0)
    var = jnp.sum(cen * cen, axis=-1, keepdims=True) * inv_m
    y = (acc - mu) * jax.lax.rsqrt(var + eps) * g_ref[...] + beta_ref[...]
    o_ref[...] = y.astype(o_ref.dtype)


def matmul_bias(x, w, b, act="none", residual=None, ln=None, tm=512, eps=1e-5,
                out_dtype=jnp.float32):
    """Row-tiled matmul (+bias, optional SiLU, optional fused residual+LayerNorm).

    x: (N, K), w: (K, M).  K and M are zero-padded to multiples of 128 (lane
    dense, unmasked stores), N is padded to a multiple of the row tile.
    bf16 MXU operands, f32 accumulation, configurable output dtype.
    """
    N, K = x.shape
    _, M = w.shape
    Np8 = _round_up(max(N, 8), 8)
    tm = min(tm, Np8)
    Np = _round_up(Np8, tm)
    Kp = _round_up(K, 128)
    Mp = _round_up(M, 128)

    xp = _maybe_pad2d(x.astype(jnp.bfloat16), Np, Kp)
    wp = _maybe_pad2d(w.astype(jnp.bfloat16), Kp, Mp)
    bp = _maybe_pad2d(b.astype(jnp.float32).reshape(1, M), 1, Mp)

    grid = (Np // tm,)
    x_spec = pl.BlockSpec((tm, Kp), lambda i: (i, 0))
    w_spec = pl.BlockSpec((Kp, Mp), lambda i: (0, 0))
    b_spec = pl.BlockSpec((1, Mp), lambda i: (0, 0))
    o_spec = pl.BlockSpec((tm, Mp), lambda i: (i, 0))

    if ln is None:
        out = pl.pallas_call(
            partial(_mm_kernel, act=act),
            out_shape=jax.ShapeDtypeStruct((Np, Mp), out_dtype),
            grid=grid,
            in_specs=[x_spec, w_spec, b_spec],
            out_specs=o_spec,
            compiler_params=_cparams(("parallel",)),
        )(xp, wp, bp)
    else:
        g, beta = ln
        gp = _maybe_pad2d(g.astype(jnp.float32).reshape(1, M), 1, Mp)
        betap = _maybe_pad2d(beta.astype(jnp.float32).reshape(1, M), 1, Mp)
        if residual is None:
            rp = jnp.zeros((1, Mp), jnp.float32)
            r_spec = pl.BlockSpec((1, Mp), lambda i: (0, 0))
        else:
            rp = _maybe_pad2d(residual.astype(jnp.float32), Np, Mp)
            r_spec = pl.BlockSpec((tm, Mp), lambda i: (i, 0))
        out = pl.pallas_call(
            partial(_mm_ln_kernel, true_m=M, eps=eps),
            out_shape=jax.ShapeDtypeStruct((Np, Mp), out_dtype),
            grid=grid,
            in_specs=[x_spec, w_spec, b_spec,
                      pl.BlockSpec((1, Mp), lambda i: (0, 0)),
                      pl.BlockSpec((1, Mp), lambda i: (0, 0)),
                      r_spec],
            out_specs=o_spec,
            compiler_params=_cparams(("parallel",)),
        )(xp, wp, bp, gp, betap, rp)
    return out[:N, :M]


# -----------------------------------------------------------------------------
# flash attention: lane-padded head dim, pre-transposed K, masked KV tail
# -----------------------------------------------------------------------------
def _flash_attn_kernel(q_ref, kt_ref, v_ref, o_ref, m_sc, l_sc, acc_sc, *,
                       s_valid, tk, need_mask):
    kv = pl.program_id(1)

    @pl.when(kv == 0)
    def _():
        m_sc[...] = jnp.full(m_sc.shape, -1e30, m_sc.dtype)
        l_sc[...] = jnp.zeros(l_sc.shape, l_sc.dtype)
        acc_sc[...] = jnp.zeros(acc_sc.shape, acc_sc.dtype)

    # (BH, tq, dp) x (BH, dp, tk) -> (BH, tq, tk); K is already (d, S)-major so
    # the contraction needs no in-kernel (XLU) transpose.
    s = jax.lax.dot_general(q_ref[...], kt_ref[...],
                            dimension_numbers=(((2,), (1,)), ((0,), (0,))),
                            preferred_element_type=jnp.float32)
    if need_mask:
        col = kv * tk + jax.lax.broadcasted_iota(jnp.int32, s.shape, 2)
        s = jnp.where(col < s_valid, s, -1e30)

    m_new = jnp.maximum(m_sc[...], s.max(-1, keepdims=True))
    alpha = jnp.exp(m_sc[...] - m_new)
    p = jnp.exp(s - m_new)
    l_sc[...] = alpha * l_sc[...] + p.sum(-1, keepdims=True)
    acc_sc[...] = alpha * acc_sc[...] + jax.lax.dot_general(
        p.astype(jnp.bfloat16), v_ref[...],
        dimension_numbers=(((2,), (1,)), ((0,), (0,))),
        preferred_element_type=jnp.float32)
    m_sc[...] = m_new

    @pl.when(kv == pl.num_programs(1) - 1)
    def _():
        o_ref[...] = (acc_sc[...] *
                      pl.reciprocal(l_sc[...], approx=True)).astype(o_ref.dtype)


def attention(q, k, v):
    """q,k,v: (B*nhead, S, d). Flash-tiled online-softmax attention, bf16 out."""
    BH, S, d = q.shape
    scale = 1.0 / math.sqrt(d)
    dp = _round_up(d, 128)          # lane-dense head dim (zero K/V cols are harmless)
    Sq = _round_up(S, 128)
    Sk = _round_up(S, 128)
    tq = _pick_tile(Sq)
    tk = _pick_tile(Sk)

    qb = jnp.pad((q * scale).astype(jnp.bfloat16),
                 ((0, 0), (0, Sq - S), (0, dp - d)))
    kb = jnp.pad(k.astype(jnp.bfloat16), ((0, 0), (0, Sk - S), (0, dp - d)))
    vb = jnp.pad(v.astype(jnp.bfloat16), ((0, 0), (0, Sk - S), (0, dp - d)))
    ktb = jnp.transpose(kb, (0, 2, 1))    # one HBM-side layout change, not per-step

    out = pl.pallas_call(
        partial(_flash_attn_kernel, s_valid=S, tk=tk, need_mask=(Sk != S)),
        out_shape=jax.ShapeDtypeStruct((BH, Sq, dp), jnp.bfloat16),
        grid=(Sq // tq, Sk // tk),
        in_specs=[pl.BlockSpec((BH, tq, dp), lambda qi, ki: (0, qi, 0)),
                  pl.BlockSpec((BH, dp, tk), lambda qi, ki: (0, 0, ki)),
                  pl.BlockSpec((BH, tk, dp), lambda qi, ki: (0, ki, 0))],
        out_specs=pl.BlockSpec((BH, tq, dp), lambda qi, ki: (0, qi, 0)),
        scratch_shapes=[pltpu.VMEM((BH, tq, 1), jnp.float32),
                        pltpu.VMEM((BH, tq, 1), jnp.float32),
                        pltpu.VMEM((BH, tq, dp), jnp.float32)],
        compiler_params=_cparams(("parallel", "arbitrary")),
    )(qb, ktb, vb)
    return out[:, :S, :d]


# -----------------------------------------------------------------------------
# decoder pointwise matmul (upconv / 1x1 conv) with fused input BN+SiLU and
# fused per-tile output statistics (sum, sumsq) for the NEXT BatchNorm.
# -----------------------------------------------------------------------------
def _dec_mm_kernel(x_ref, w_ref, b_ref, sc_ref, sh_ref, o_ref, st_ref, *,
                   n_true, tm, silu_in):
    i = pl.program_id(0)
    x = x_ref[...].astype(jnp.float32)
    x = x * sc_ref[...] + sh_ref[...]          # producer BN affine, fused
    if silu_in:
        x = x * jax.nn.sigmoid(x)
    acc = jnp.dot(x.astype(jnp.bfloat16), w_ref[...],
                  preferred_element_type=jnp.float32)
    acc = acc + b_ref[...]
    o_ref[...] = acc.astype(o_ref.dtype)
    # padded rows are masked out of the stats (they may hold affine garbage)
    rows = i * tm + jax.lax.broadcasted_iota(jnp.int32, acc.shape, 0)
    a = jnp.where(rows < n_true, acc, 0.0)
    st_ref[0] = jnp.concatenate(
        [jnp.sum(a, axis=0, keepdims=True),
         jnp.sum(a * a, axis=0, keepdims=True)], axis=0)


def dec_pointwise(x, w, b, in_scale=None, in_shift=None, silu_in=False,
                  out_dtype=jnp.bfloat16, tm=512):
    N, K = x.shape
    _, M = w.shape
    Np8 = _round_up(max(N, 8), 8)
    tm = min(tm, Np8)
    Np = _round_up(Np8, tm)
    Kp = _round_up(K, 128)
    Mp = _round_up(M, 128)

    if in_scale is None:
        in_scale = jnp.ones((K,), jnp.float32)
    if in_shift is None:
        in_shift = jnp.zeros((K,), jnp.float32)

    xp = _maybe_pad2d(x, Np, Kp)               # keep producer dtype (bf16) for the DMA
    wp = _maybe_pad2d(w.astype(jnp.bfloat16), Kp, Mp)
    bp = _maybe_pad2d(b.astype(jnp.float32).reshape(1, M), 1, Mp)
    scp = _maybe_pad2d(in_scale.astype(jnp.float32).reshape(1, K), 1, Kp)
    shp = _maybe_pad2d(in_shift.astype(jnp.float32).reshape(1, K), 1, Kp)

    ntiles = Np // tm
    out, st = pl.pallas_call(
        partial(_dec_mm_kernel, n_true=N, tm=tm, silu_in=silu_in),
        out_shape=(jax.ShapeDtypeStruct((Np, Mp), out_dtype),
                   jax.ShapeDtypeStruct((ntiles, 2, Mp), jnp.float32)),
        grid=(ntiles,),
        in_specs=[pl.BlockSpec((tm, Kp), lambda i: (i, 0)),
                  pl.BlockSpec((Kp, Mp), lambda i: (0, 0)),
                  pl.BlockSpec((1, Mp), lambda i: (0, 0)),
                  pl.BlockSpec((1, Kp), lambda i: (0, 0)),
                  pl.BlockSpec((1, Kp), lambda i: (0, 0))],
        out_specs=(pl.BlockSpec((tm, Mp), lambda i: (i, 0)),
                   pl.BlockSpec((1, 2, Mp), lambda i: (i, 0, 0))),
        compiler_params=_cparams(("parallel",)),
    )(xp, wp, bp, scp, shp)
    stats = st.sum(axis=0)[:, :M]              # tiny (2, M) reduce in JAX
    return out[:N, :M], stats


# -----------------------------------------------------------------------------
# 3x3 conv with fused input BN+SiLU (+halo re-zero) and fused output statistics
# -----------------------------------------------------------------------------
def _conv3x3_kernel(x_ref, w_ref, b_ref, sc_ref, sh_ref, o_ref, st_ref, *,
                    H, W, Cin, Cout, silu_in):
    x = x_ref[0].astype(jnp.float32)                       # (H+2, W+2, Cin)
    y = x * sc_ref[...].reshape(1, 1, Cin) + sh_ref[...].reshape(1, 1, Cin)
    if silu_in:
        y = y * jax.nn.sigmoid(y)
    # the conv's zero padding applies AFTER BN+SiLU: re-zero the halo ring
    ri = jax.lax.broadcasted_iota(jnp.int32, (H + 2, W + 2), 0)
    ci = jax.lax.broadcasted_iota(jnp.int32, (H + 2, W + 2), 1)
    interior = ((ri >= 1) & (ri <= H) & (ci >= 1) & (ci <= W))[:, :, None]
    y = jnp.where(interior, y, 0.0)
    xb = y.astype(jnp.bfloat16)

    acc = jnp.zeros((H * W, Cout), jnp.float32)
    # TODO(synk): stack the dy taps along K (K=3*Cin per dx) once lane-unaligned
    # in-kernel concat is validated; per-tap K=Cin kept for a guaranteed lowering.
    for dx in range(3):
        xs = xb[:, dx:dx + W, :].reshape((H + 2) * W, Cin)
        for dy in range(3):
            patch = xs[dy * W:(dy + H) * W, :]             # aligned sublane slice
            acc = acc + jnp.dot(patch, w_ref[dy * 3 + dx],
                                preferred_element_type=jnp.float32)
    acc = acc + b_ref[...]
    o_ref[0] = acc.astype(o_ref.dtype).reshape(H, W, Cout)
    st_ref[0] = jnp.concatenate(
        [jnp.sum(acc, axis=0, keepdims=True),
         jnp.sum(acc * acc, axis=0, keepdims=True)], axis=0)


def conv3x3_bn_fused(x, w, b, in_scale, in_shift, silu_in=True):
    """x: (B,H,W,Cin) NHWC (bf16 or f32); w: (9, Cin, Cout) with tap order dy*3+dx.
    Applies the producer BN affine (+SiLU) on the input inside the kernel and
    returns (bf16 output, (2, Cout) batch sum/sumsq of the output)."""
    Bb, H, W, C = x.shape
    Cout = w.shape[-1]
    xp = jnp.pad(x.astype(jnp.bfloat16), ((0, 0), (1, 1), (1, 1), (0, 0)))
    # TODO(synk): at module scale (360x720) the H axis needs halo'd tiling to fit
    # v7x's 64 MiB VMEM; one image per grid step is enough at the toy size.
    out, st = pl.pallas_call(
        partial(_conv3x3_kernel, H=H, W=W, Cin=C, Cout=Cout, silu_in=silu_in),
        out_shape=(jax.ShapeDtypeStruct((Bb, H, W, Cout), jnp.bfloat16),
                   jax.ShapeDtypeStruct((Bb, 2, Cout), jnp.float32)),
        grid=(Bb,),
        in_specs=[pl.BlockSpec((1, H + 2, W + 2, C), lambda i: (i, 0, 0, 0)),
                  pl.BlockSpec((9, C, Cout), lambda i: (0, 0, 0)),
                  pl.BlockSpec((1, Cout), lambda i: (0, 0)),
                  pl.BlockSpec((1, C), lambda i: (0, 0)),
                  pl.BlockSpec((1, C), lambda i: (0, 0))],
        out_specs=(pl.BlockSpec((1, H, W, Cout), lambda i: (i, 0, 0, 0)),
                   pl.BlockSpec((1, 2, Cout), lambda i: (i, 0, 0))),
        compiler_params=_cparams(("parallel",)),
    )(xp, w.astype(jnp.bfloat16), b.astype(jnp.float32).reshape(1, Cout),
      in_scale.astype(jnp.float32).reshape(1, C),
      in_shift.astype(jnp.float32).reshape(1, C))
    return out, st.sum(axis=0)


def upconv2x2_bn_fused(x, w_mat, bias, in_scale=None, in_shift=None, silu_in=False):
    """ConvTranspose2d(k=2, s=2). w_mat: (Cin, Cout*4), col order co*4+a*2+c.
    Fuses the producer BN affine(+SiLU) on the input and emits output stats."""
    Bb, H, W, C = x.shape
    Cout = w_mat.shape[1] // 4
    y2d, st = dec_pointwise(x.reshape(Bb * H * W, C), w_mat, jnp.repeat(bias, 4),
                            in_scale, in_shift, silu_in, out_dtype=jnp.bfloat16)
    y = y2d.reshape(Bb, H, W, Cout, 2, 2)
    # TODO(synk): the pixel shuffle could be folded into the out_spec index_map to
    # save one HBM pass of the freshly upsampled map; kept in XLA for clarity.
    y = jnp.transpose(y, (0, 1, 4, 2, 5, 3)).reshape(Bb, 2 * H, 2 * W, Cout)
    st = st.reshape(2, Cout, 4).sum(axis=-1)   # reduce the 4 spatial parities
    return y, st


def conv1x1_bn_fused(x, w, b, in_scale, in_shift, silu_in=True):
    Bb, H, W, C = x.shape
    y2d, _ = dec_pointwise(x.reshape(Bb * H * W, C), w, b, in_scale, in_shift,
                           silu_in, out_dtype=jnp.float32)
    return y2d.reshape(Bb, H, W, -1)


def bn_scale_shift(stats, count, gamma, beta, eps=1e-5):
    """Training-mode BatchNorm batch statistics -> per-channel (scale, shift)."""
    mean = stats[0] / count
    var = jnp.maximum(stats[1] / count - mean * mean, 0.0)
    scale = gamma.astype(jnp.float32) * jax.lax.rsqrt(var + eps)
    shift = beta.astype(jnp.float32) - mean * scale
    return scale, shift


# -----------------------------------------------------------------------------
# geometric feature derivation (glue, matches the reference helpers)
# -----------------------------------------------------------------------------
def l2norm(v, eps=1e-12):
    n = jnp.linalg.norm(v, axis=-1, keepdims=True)
    return v / jnp.maximum(n, eps)


def discretize(t, lo, hi, num_discrete):
    t = (t - lo) / (hi - lo) * num_discrete - 0.5
    return jnp.clip(jnp.round(t), 0, num_discrete - 1).astype(jnp.int32)


def embed(table, idx):
    return jnp.take(table, idx, axis=0)


def get_face_coords(vertices, faces):
    return jax.vmap(lambda v, f: v[f])(vertices, faces)   # (B, NF, NVF, 3)


def coords_interangle(x, y, eps=1e-5):
    nv = l2norm(x - y)
    rolled = jnp.concatenate([nv[..., -1:], nv[..., :-1]], axis=3)
    nd = jnp.clip(-(nv * rolled).sum(axis=2), -1 + eps, 1 - eps)
    return jnp.arccos(nd)


def polar_to_cartesian2(theta_deg, phi_deg):
    th, ph = jnp.deg2rad(theta_deg), jnp.deg2rad(phi_deg)
    return jnp.stack([jnp.sin(ph) * jnp.cos(th),
                      jnp.sin(ph) * jnp.sin(th),
                      jnp.cos(ph)], axis=1)


def vector_angle(x, y, eps=1e-5):
    nd = jnp.clip(-(l2norm(x) * l2norm(y)).sum(axis=-1), -1 + eps, 1 - eps)
    return jnp.arccos(nd)


# -----------------------------------------------------------------------------
# model
# -----------------------------------------------------------------------------
def transformer_layer(lp, x):
    """Post-norm TransformerEncoderLayer (nhead=4, SiLU FFN, dropout=0)."""
    S, Bb, C = x.shape
    hd = C // NHEAD
    x2d = x.reshape(S * Bb, C)
    qkv = matmul_bias(x2d, lp["in_w"], lp["in_b"],
                      out_dtype=jnp.bfloat16).reshape(S, Bb, 3 * C)

    def split_heads(t):
        return jnp.transpose(t.reshape(S, Bb, NHEAD, hd),
                             (1, 2, 0, 3)).reshape(Bb * NHEAD, S, hd)

    q = split_heads(qkv[..., :C])
    k = split_heads(qkv[..., C:2 * C])
    v = split_heads(qkv[..., 2 * C:])
    o = attention(q, k, v)                                 # bf16
    o = jnp.transpose(o.reshape(Bb, NHEAD, S, hd),
                      (2, 0, 1, 3)).reshape(S * Bb, C)
    # fused: out-proj + residual + LayerNorm
    x2d = matmul_bias(o, lp["out_w"], lp["out_b"],
                      residual=x2d, ln=(lp["ln1_g"], lp["ln1_b"]))
    h = matmul_bias(x2d, lp["ff1_w"], lp["ff1_b"], act="silu",
                    out_dtype=jnp.bfloat16)
    # fused: ff2 + residual + LayerNorm
    x2d = matmul_bias(h, lp["ff2_w"], lp["ff2_b"],
                      residual=x2d, ln=(lp["ln2_g"], lp["ln2_b"]))
    return x2d.reshape(S, Bb, C)


def encode(P, vertices, faces, in_em):
    theta, phi, freq = in_em[1], in_em[2], in_em[3]
    # TODO(synk): transform_to_log_coordinates is undefined in the provided
    # source; approximated with a log10 normalisation into [0, 1].
    lg_emfreq = jnp.clip((jnp.log10(freq) + 1.0) / 2.0, 0.0, 1.0)

    fc = get_face_coords(vertices, faces)                       # (B, NF, 3, 3)
    fc = jnp.pad(fc, ((0, 0), (0, PADSIZE - NF), (0, 0), (0, 0)))
    shifted = jnp.concatenate([fc[:, :, -1:], fc[:, :, :-1]], axis=2)

    angles = coords_interangle(fc, shifted)                     # (B, P, 3)
    diff = fc - shifted
    edge1, edge2 = diff[:, :, 0], diff[:, :, 1]
    crossp = jnp.cross(edge1, edge2)
    normals = l2norm(crossp)
    area = jnp.linalg.norm(crossp, axis=-1, keepdims=True) * 0.5
    em_vec = polar_to_cartesian2(theta, phi)                    # (B, 3)
    em_mtx = jnp.broadcast_to(em_vec[:, None, :], (B, PADSIZE, 3))
    emnoangle = vector_angle(normals, em_mtx)                   # (B, P)
    inc_freq_mtx = jnp.broadcast_to(lg_emfreq[:, None], (B, PADSIZE))

    angle_e = embed(P["angle_embed"], discretize(angles, 0.0, math.pi, NUM_DISC_ANGLE))
    area_e = embed(P["area_embed"], discretize(area, 0.0, 4.0, NUM_DISC_AREA))
    normal_e = embed(P["normal_embed"], discretize(normals, -1.0, 1.0, NUM_DISC_NORMAL))
    emnoang_e = embed(P["emnoangle_embed"], discretize(emnoangle, 0.0, math.pi, NUM_DISC_EMNOANGLE))
    emangle_e = embed(P["emangle_embed"], discretize(em_mtx, -1.0, 1.0, NUM_DISC_EMANGLE))
    emfreq_e = embed(P["emfreq_embed"], discretize(inc_freq_mtx, 0.0, 1.0, NUM_DISC_EMFREQ))
    dcoords = discretize(fc, -1.0, 1.0, NUM_DISC_COORS).reshape(B, PADSIZE, 9)
    coor_e = embed(P["coor_embed"], dcoords).reshape(B, PADSIZE, 9 * DIM_COOR)

    face_embed = jnp.concatenate([
        coor_e,
        angle_e.reshape(B, PADSIZE, -1),
        area_e.reshape(B, PADSIZE, -1),
        normal_e.reshape(B, PADSIZE, -1),
        emnoang_e.reshape(B, PADSIZE, -1),
        emangle_e.reshape(B, PADSIZE, -1),
        emfreq_e.reshape(B, PADSIZE, -1),
        inc_freq_mtx[..., None],
    ], axis=-1)                                                 # (B, P, FEAT_DIM)

    # project_in2 (K = FEAT_DIM zero-padded to 256 lanes inside matmul_bias)
    x = matmul_bias(face_embed.reshape(B * PADSIZE, FEAT_DIM), P["proj_w"], P["proj_b"])
    x = x.reshape(B, PADSIZE, HIDDEN)
    # NB: raw reshape (not transpose), exactly as in the reference
    x = jnp.reshape(x, (PADSIZE, B, HIDDEN))                    # (L, B, C)

    # TODO(synk): TransformerWithPooling / PositionalEncoding sources are not
    # provided; approximated as post-norm encoder layers followed by a
    # pool_size=2 max-pool along the sequence axis (seq L -> L / 2^layers).
    for l in range(ENC_LAYERS):
        x = transformer_layer(P[f"enc{l}"], x)
        S = x.shape[0]
        x = x.reshape(S // 2, 2, B, HIDDEN).max(axis=1)

    # the two trailing reshapes in the reference compose to the identity
    return x, lg_emfreq


def decode(P, x, in_em1, lg_emfreq):
    theta, phi = in_em1[1], in_em1[2]
    in_angle = jnp.stack([theta / 180.0, phi / 360.0], axis=1).astype(jnp.float32)  # (B, 2)

    condangle1 = matmul_bias(in_angle, P["ang1_w"], P["ang1_b"]).reshape(B, C2, LP)
    condangle2 = matmul_bias(in_angle, P["ang2_w"], P["ang2_b"]).reshape(B, C2, H0 * W0)
    dfreq = discretize(lg_emfreq, 0.0, 1.0, NUM_DISC_EMFREQ)
    condfreq1 = embed(P["emfreq_embed1"], dfreq).reshape(B, C2, LP)
    condfreq2 = embed(P["emfreq_embed2"], dfreq).reshape(B, C2, H0 * W0)

    x = jnp.reshape(x, (B, HIDDEN, LP))          # raw reshape, as in the reference
    # conv1d1 (kernel_size=1) == per-position channel matmul
    xt = jnp.transpose(x, (0, 2, 1)).reshape(B * LP, HIDDEN)
    xt = matmul_bias(xt, P["conv1d1_w"], P["conv1d1_b"])
    x = jnp.transpose(xt.reshape(B, LP, C2), (0, 2, 1))
    x = x + condangle1 + condfreq1

    x2d = x.reshape(B * C2, LP)
    x2d = matmul_bias(x2d, P["fc1_w"], P["fc1_b"], act="silu", out_dtype=jnp.bfloat16)
    # fused: fc2 + LayerNorm
    x2d = matmul_bias(x2d, P["fc2_w"], P["fc2_b"], ln=(P["fc_ln_g"], P["fc_ln_b"]))
    x = x2d.reshape(B, C2, H0 * W0)
    x = x + condangle2 + condfreq2

    x = x.reshape(B, C2, H0, W0)
    x = jnp.transpose(x, (0, 2, 3, 1))           # NCHW -> NHWC for the conv kernels

    n1 = B * 2 * H0 * 2 * W0
    n2 = B * 4 * H0 * 4 * W0
    n3 = B * 8 * H0 * 8 * W0

    # --- stage 1: every conv/upconv fuses the previous BN(+SiLU) and emits stats
    x, st = upconv2x2_bn_fused(x, P["up1_w"], P["up1_b"])
    sc, sh = bn_scale_shift(st, n1, P["bn1_g"], P["bn1_b"])
    x, st = conv3x3_bn_fused(x, P["c11_w"], P["c11_b"], sc, sh, silu_in=True)
    sc, sh = bn_scale_shift(st, n1, P["bn11_g"], P["bn11_b"])
    x, st = conv3x3_bn_fused(x, P["c12_w"], P["c12_b"], sc, sh, silu_in=True)
    sc, sh = bn_scale_shift(st, n1, P["bn12_g"], P["bn12_b"])

    # --- stage 2
    x, st = upconv2x2_bn_fused(x, P["up2_w"], P["up2_b"], sc, sh, silu_in=True)
    sc, sh = bn_scale_shift(st, n2, P["bn2_g"], P["bn2_b"])
    x, st = conv3x3_bn_fused(x, P["c21_w"], P["c21_b"], sc, sh, silu_in=True)
    sc, sh = bn_scale_shift(st, n2, P["bn21_g"], P["bn21_b"])
    x, st = conv3x3_bn_fused(x, P["c22_w"], P["c22_b"], sc, sh, silu_in=True)
    sc, sh = bn_scale_shift(st, n2, P["bn22_g"], P["bn22_b"])

    # --- stage 3
    x, st = upconv2x2_bn_fused(x, P["up3_w"], P["up3_b"], sc, sh, silu_in=True)
    sc, sh = bn_scale_shift(st, n3, P["bn3_g"], P["bn3_b"])
    # no SiLU between bn3 and conv3_1 in the reference
    x, st = conv3x3_bn_fused(x, P["c31_w"], P["c31_b"], sc, sh, silu_in=False)
    sc, sh = bn_scale_shift(st, n3, P["bn31_g"], P["bn31_b"])
    x, st = conv3x3_bn_fused(x, P["c32_w"], P["c32_b"], sc, sh, silu_in=True)
    sc, sh = bn_scale_shift(st, n3, P["bn32_g"], P["bn32_b"])

    x = conv1x1_bn_fused(x, P["cf_w"], P["cf_b"], sc, sh, silu_in=True)
    return x[..., 0]                             # squeeze(dim=1) equiv.


def forward(P, vertices, faces, geoinfo, in_em, GT=None):
    encoded, lg_emfreq = encode(P, vertices, faces, in_em)
    decoded = decode(P, encoded, in_em, lg_emfreq)
    if GT is None:
        return decoded
    # TODO(synk): the GT branch (TVL1Loss / ContrastiveLoss with trimesh .obj
    # file loading, psnr, ssim) depends on undefined helpers and file I/O and
    # is not reproduced here.
    return decoded


# -----------------------------------------------------------------------------
# deterministic parameter initialization
# -----------------------------------------------------------------------------
class KeyGen:
    def __init__(self, key):
        self.key = key

    def __call__(self):
        self.key, k = jax.random.split(self.key)
        return k


def _init(key, shape, scale=0.05):
    return scale * jax.random.normal(key, shape, dtype=jnp.float32)


def init_params(key):
    ks = KeyGen(key)
    P = {}

    def lin(name, fi, fo):
        P[name + "_w"] = _init(ks(), (fi, fo))
        P[name + "_b"] = jnp.zeros((fo,), jnp.float32)

    def conv3(name, ci, co):
        P[name + "_w"] = _init(ks(), (9, ci, co))           # tap order dy*3+dx
        P[name + "_b"] = jnp.zeros((co,), jnp.float32)

    def norm(name, c):
        P[name + "_g"] = jnp.ones((c,), jnp.float32)
        P[name + "_b"] = jnp.zeros((c,), jnp.float32)

    # embeddings
    P["coor_embed"] = _init(ks(), (NUM_DISC_COORS, DIM_COOR))
    P["angle_embed"] = _init(ks(), (NUM_DISC_ANGLE, DIM_ANGLE))
    P["area_embed"] = _init(ks(), (NUM_DISC_AREA, DIM_AREA))
    P["normal_embed"] = _init(ks(), (NUM_DISC_NORMAL, DIM_NORMAL))
    P["emnoangle_embed"] = _init(ks(), (NUM_DISC_EMNOANGLE, DIM_EMNOANGLE))
    P["emangle_embed"] = _init(ks(), (NUM_DISC_EMANGLE, DIM_EMANGLE))
    P["emfreq_embed"] = _init(ks(), (NUM_DISC_EMFREQ, DIM_EMFREQ))
    P["emfreq_embed1"] = _init(ks(), (NUM_DISC_EMFREQ, C2 * LP))
    P["emfreq_embed2"] = _init(ks(), (NUM_DISC_EMFREQ, C2 * H0 * W0))

    # project_in2
    lin("proj", FEAT_DIM, HIDDEN)

    # transformer-with-pooling layers
    for l in range(ENC_LAYERS):
        lp = {
            "in_w": _init(ks(), (HIDDEN, 3 * HIDDEN)),
            "in_b": jnp.zeros((3 * HIDDEN,), jnp.float32),
            "out_w": _init(ks(), (HIDDEN, HIDDEN)),
            "out_b": jnp.zeros((HIDDEN,), jnp.float32),
            "ln1_g": jnp.ones((HIDDEN,), jnp.float32),
            "ln1_b": jnp.zeros((HIDDEN,), jnp.float32),
            "ff1_w": _init(ks(), (HIDDEN, DFF)),
            "ff1_b": jnp.zeros((DFF,), jnp.float32),
            "ff2_w": _init(ks(), (DFF, HIDDEN)),
            "ff2_b": jnp.zeros((HIDDEN,), jnp.float32),
            "ln2_g": jnp.ones((HIDDEN,), jnp.float32),
            "ln2_b": jnp.zeros((HIDDEN,), jnp.float32),
        }
        P[f"enc{l}"] = lp

    # decode head
    lin("conv1d1", HIDDEN, C2)
    lin("fc1", LP, LP)
    lin("fc2", LP, H0 * W0)
    norm("fc_ln", H0 * W0)
    lin("ang1", 2, C2 * LP)
    lin("ang2", 2, C2 * H0 * W0)

    c_half, c_quart, c_eighth = C2 // 2, C2 // 4, C2 // 8
    lin("up1", C2, c_half * 4);        norm("bn1", c_half)
    conv3("c11", c_half, c_half);      norm("bn11", c_half)
    conv3("c12", c_half, c_half);      norm("bn12", c_half)
    lin("up2", c_half, c_quart * 4);   norm("bn2", c_quart)
    conv3("c21", c_quart, c_quart);    norm("bn21", c_quart)
    conv3("c22", c_quart, c_quart);    norm("bn22", c_quart)
    lin("up3", c_quart, c_eighth * 4); norm("bn3", c_eighth)
    conv3("c31", c_eighth, c_eighth);  norm("bn31", c_eighth)
    conv3("c32", c_eighth, c_eighth);  norm("bn32", c_eighth)
    lin("cf", c_eighth, 1)
    # fix upconv bias shapes: ConvTranspose bias is per output channel
    P["up1_b"] = jnp.zeros((c_half,), jnp.float32)
    P["up2_b"] = jnp.zeros((c_quart,), jnp.float32)
    P["up3_b"] = jnp.zeros((c_eighth,), jnp.float32)
    return P


# -----------------------------------------------------------------------------
# main
# -----------------------------------------------------------------------------
if __name__ == "__main__":
    root = jax.random.PRNGKey(0)
    kv, kf, kp = jax.random.split(root, 3)

    vertices = jax.random.uniform(kv, (B, NV, 3), jnp.float32, -1.0, 1.0)
    faces = jax.random.randint(kf, (B, NF, NVF), 0, NV, dtype=jnp.int32)
    theta = jnp.array([150.0, 90.0], dtype=jnp.float32)     # incidence theta (deg)
    phi = jnp.array([60.0, 210.0], dtype=jnp.float32)       # incidence phi (deg)
    freq = jnp.array([0.9, 0.55], dtype=jnp.float32)        # EM frequency
    in_em = [["b943", "b7fd"], theta, phi, freq]
    geoinfo = [1.0, 1.0]                                     # unused numerically

    params = init_params(kp)
    decoded = forward(params, vertices, faces, geoinfo, in_em, GT=None)
    decoded = jax.block_until_ready(decoded)

    assert decoded.shape == (B, 8 * H0, 8 * W0), decoded.shape
    assert bool(jnp.all(jnp.isfinite(decoded)))
    print("KERNEL_OK")
</pallas_src>

<mosaic_0001>
module attributes {stable_mosaic.version = 11 : i64} {
  func.func @_mm_kernel(%arg0: i32, %arg1: memref<64x256xbf16, #tpu.memory_space<vmem>>, %arg2: memref<256x128xbf16, #tpu.memory_space<vmem>>, %arg3: memref<1x128xf32, #tpu.memory_space<vmem>>, %arg4: memref<64x128xf32, #tpu.memory_space<vmem>>) attributes {dimension_semantics = [#tpu.dimension_semantics<parallel>], iteration_bounds = array<i64: 1>, scalar_prefetch = 0 : i64, scratch_operands = 0 : i64, tpu.core_type = #tpu.core_type<tc>, window_params = [{transform_indices = @transform_0, window_bounds = array<i64: 64, 256>}, {pipeline_mode = #tpu.pipeline_mode<synchronous>, transform_indices = @transform_1, window_bounds = array<i64: 256, 128>}, {pipeline_mode = #tpu.pipeline_mode<synchronous>, transform_indices = @transform_2, window_bounds = array<i64: 1, 128>}, {transform_indices = @transform_3, window_bounds = array<i64: 64, 128>}]} {
    %c0 = arith.constant 0 : index
    %c0_0 = arith.constant 0 : index
    %0 = vector.load %arg1[%c0, %c0_0] : memref<64x256xbf16, #tpu.memory_space<vmem>>, vector<64x256xbf16>
    %c0_1 = arith.constant 0 : index
    %c0_2 = arith.constant 0 : index
    %1 = vector.load %arg2[%c0_1, %c0_2] : memref<256x128xbf16, #tpu.memory_space<vmem>>, vector<256x128xbf16>
    %cst = arith.constant dense<0.000000e+00> : vector<64x128xf32>
    %2 = tpu.matmul %0, %1, %cst {dimension_numbers = #tpu.dot_dimension_numbers<[1], [0], [0], [1], [0, 0, 1, 1], [], []>} : vector<64x256xbf16>, vector<256x128xbf16>, vector<64x128xf32> -> vector<64x128xf32>
    %c0_3 = arith.constant 0 : index
    %c0_4 = arith.constant 0 : index
    %3 = vector.load %arg3[%c0_3, %c0_4] : memref<1x128xf32, #tpu.memory_space<vmem>>, vector<1x128xf32>
    %4 = vector.broadcast %3 : vector<1x128xf32> to vector<64x128xf32>
    %5 = arith.addf %2, %4 : vector<64x128xf32>
    %c0_5 = arith.constant 0 : index
    %c0_6 = arith.constant 0 : index
    %6 = vector.load %arg4[%c0_5, %c0_6] : memref<64x128xf32, #tpu.memory_space<vmem>>, vector<64x128xf32>
    tpu.vector_store %arg4[%c0_5, %c0_6], %5 {strides = array<i32>} : memref<64x128xf32, #tpu.memory_space<vmem>>, vector<64x128xf32>,
    return
  }
  func.func @transform_0(%arg0: i32) -> (i32, i32) {
    %c0_i32 = arith.constant 0 : i32
    %c0_i32_0 = arith.constant 0 : i32
    return %arg0, %c0_i32 : i32, i32
  }
  func.func @transform_1(%arg0: i32) -> (i32, i32) {
    %c0_i32 = arith.constant 0 : i32
    %c0_i32_0 = arith.constant 0 : i32
    %c0_i32_1 = arith.constant 0 : i32
    return %c0_i32, %c0_i32_0 : i32, i32
  }
  func.func @transform_2(%arg0: i32) -> (i32, i32) {
    %c0_i32 = arith.constant 0 : i32
    %c0_i32_0 = arith.constant 0 : i32
    %c0_i32_1 = arith.constant 0 : i32
    return %c0_i32, %c0_i32_0 : i32, i32
  }
  func.func @transform_3(%arg0: i32) -> (i32, i32) {
    %c0_i32 = arith.constant 0 : i32
    %c0_i32_0 = arith.constant 0 : i32
    return %arg0, %c0_i32 : i32, i32
  }
}

</mosaic_0001>

<bundles_post_ra>
// kernel: tpu_custom_call.1
= control target key start
LH: loop header
LB: loop body
LE: loop exit
PB: predicated region body
PF: predicated region fallthrough
CT: control target
= control target key end

     0   :  { %8 = vsyncpa [#allocation3], 0  ;;  %s578_s0 = inlined_call_operand.hbm [shape: bf16[64,256], index: 0, kind: input, shape index: {}]   ;;  %s579_s1 = inlined_call_operand.hbm [shape: bf16[256,128], index: 1, kind: input, shape index: {}]   ;;  %s580_s2 = inlined_call_operand.vmem [shape: f32[1,128], index: 2, kind: input, shape index: {}]   ;;  %s581_s3 = inlined_call_operand.hbm [shape: f32[64,128], index: 3, kind: output, shape index: {}]  }
   0x1   :  { %9 = vsyncpa [#allocation6], 0 }
   0x2   :  { %10 = vsyncpa [#allocation4], 0  ;;  %s506_s12 = smov [#allocation2]   ;;  %s434_s16 = scalar_lea.hbm %s578_s0, 1024 }
   0x3   :  { %s16_s13 = sshll.u32 %s506_s12, 4  ;;  %p435_p0 = scmp.ne.s32.totalorder %s578_s0, %s434_s16  ;;  %s17_s13 = int_to_ptr.vmem [resolvable:$true] %s16_s13 }
   0x4   :  { %p438_p1 = scmp.lt.u32.totalorder %s434_s16, %s578_s0 }
   0x6   :  { %p440_p2 = pnand %p438_p1, %p435_p0 }
   0x8   :  { %443 = shalt.err (!%p440_p2)
}
   0x9   :  { %s444_s21 = scalar_lea.vmem %s17_s13, 1024  ;;  %p449_p4 = scmp.lt.s32.totalorder %s17_s13, %s17_s13 }
   0xa   :  { %p445_p3 = scmp.ne.s32.totalorder %s17_s13, %s444_s21  ;;  %p450_p5 = scmp.lt.s32.totalorder %s444_s21, %s444_s21 }
   0xc   :  { %p451_p6 = por %p450_p5, %p449_p4 }
   0xe   :  { %p452_p7 = pnand %p451_p6, %p445_p3 }
  0x10   :  { %455 = shalt.err (!%p452_p7)
}
  0x11   :  { %s507_s22 = smov 128   ;;  %s508_s23 = smov 8  }
  0x12   :  { %22 = dma.hbm_to_vmem [thread:$0]  %s578_s0, 1024, %s17_s13, [#allocation3], %s507_s22, %s507_s22, %s508_s23  }
  0x13   :  { %s509_s26 = smov [#allocation5]   ;;  %s456_s30 = scalar_lea.hbm %s579_s1, 2048 }
  0x14   :  { %s28_s27 = sshll.u32 %s509_s26, 4  ;;  %p457_p8 = scmp.ne.s32.totalorder %s579_s1, %s456_s30  ;;  %s29_s27 = int_to_ptr.vmem [resolvable:$true] %s28_s27 }
  0x15   :  { %p460_p9 = scmp.lt.u32.totalorder %s456_s30, %s579_s1 }
  0x17   :  { %p462_p10 = pnand %p460_p9, %p457_p8 }
  0x19   :  { %465 = shalt.err (!%p462_p10)
}
  0x1a   :  { %s466_s8 = scalar_lea.vmem %s29_s27, 2048  ;;  %p471_p12 = scmp.lt.s32.totalorder %s29_s27, %s29_s27 }
  0x1b   :  { %p467_p11 = scmp.ne.s32.totalorder %s29_s27, %s466_s8  ;;  %p472_p13 = scmp.lt.s32.totalorder %s466_s8, %s466_s8 }
  0x1d   :  { %p473_p0 = por %p472_p13, %p471_p12 }
  0x1f   :  { %p474_p1 = pnand %p473_p0, %p467_p11 }
  0x21   :  { %477 = shalt.err (!%p474_p1)
}
  0x22   :  { %s510_s0 = smov 64   ;;  %s511_s9 = smov 4  }
  0x23   :  { %34 = dma.hbm_to_vmem [thread:$0]  %s579_s1, 2048, %s29_s27, [#allocation6], %s510_s0, %s510_s0, %s511_s9  }
  0x24   :  { %500 = dma.done.wait [#allocation3], 1024  }
  0x25   :  { %501 = vsyncadd [#allocation3], 4294966272 }
  0x26   :  { %502 = dma.done.wait [#allocation6], 2048  }
  0x27   :  { %503 = vsyncadd [#allocation6], 4294965248  ;;  %v406_v0 = vld [vmem:[#allocation5 + $0x40] sm:$0xff]   ;;  %v408_v2 = vld [vmem:[#allocation5 + $0x48] sm:$0xff]  }
  0x28   :  { %v407_v1 = vld [vmem:[#allocation5] sm:$0xff]   ;;  %343 = vmatprep.subr.bf16.mxu0 %v406_v0  ;;  %383 = vmatprep.subr.bf16.mxu1 %v406_v0  ;;  %v409_v3 = vld [vmem:[#allocation5 + $0x8] sm:$0xff]   ;;  %v410_v4 = vld [vmem:[#allocation5 + $0x50] sm:$0xff]  }
  0x29   :  { %344 = vmatpush3.bf16.msra.mxu0 %v407_v1  ;;  %391 = vmatpush3.bf16.msra.mxu1 %v407_v1  ;;  %v411_v5 = vld [vmem:[#allocation5 + $0x10] sm:$0xff]   ;;  %v412_v6 = vld [vmem:[#allocation5 + $0x58] sm:$0xff]   ;;  %v414_v8 = vld [vmem:[#allocation5 + $0x60] sm:$0xff]  }
  0x2a   :  { %345 = vmatprep.subr.bf16.mxu0 %v408_v2  ;;  %384 = vmatprep.subr.bf16.mxu1 %v408_v2  ;;  %v413_v7 = vld [vmem:[#allocation5 + $0x18] sm:$0xff]   ;;  %v415_v9 = vld [vmem:[#allocation5 + $0x20] sm:$0xff]   ;;  %v416_v10 = vld [vmem:[#allocation5 + $0x68] sm:$0xff]  }
  0x2b   :  { %v424_v11 = vld [vmem:[#allocation2 + $0x4] ss:$8 sps:$4 sm:$0xff]   ;;  %v418_v14 = vld [vmem:[#allocation5 + $0x70] sm:$0xff]   ;;  %v420_v16 = vld [vmem:[#allocation5 + $0x78] sm:$0xff]  }
  0x2c   :  { %v427_v12 = vld [vmem:[#allocation2 + $0x24] ss:$8 sps:$4 sm:$0xff]   ;;  %259 = vmatprep.mubr.bf16.mxu0 %v424_v11  ;;  %v419_v15 = vld [vmem:[#allocation5 + $0x30] sm:$0xff]   ;;  %v421_v17 = vld [vmem:[#allocation5 + $0x38] sm:$0xff]  }
  0x2d   :  { %346 = vmatpush3.bf16.msra.mxu0 %v409_v3  ;;  %392 = vmatpush3.bf16.msra.mxu1 %v409_v3  ;;  %v417_v13 = vld [vmem:[#allocation5 + $0x28] sm:$0xff]   ;;  %v428_v20 = vld [vmem:[#allocation2 + $0x14] ss:$8 sps:$4 sm:$0xff]   ;;  %v432_v22 = vld [vmem:[#allocation2 + $0x10] ss:$8 sps:$4 sm:$0xff]  }
  0x2e   :  { %347 = vmatprep.subr.bf16.mxu0 %v410_v4  ;;  %385 = vmatprep.subr.bf16.mxu1 %v410_v4  ;;  %v422_v18 = vld [vmem:[#allocation2] ss:$8 sps:$4 sm:$0xff]   ;;  %v430_v21 = vld [vmem:[#allocation2 + $0x34] ss:$8 sps:$4 sm:$0xff]   ;;  %v433_v23 = vld [vmem:[#allocation2 + $0x30] ss:$8 sps:$4 sm:$0xff]  }
  0x2f   :  { %275 = vmatprep.mubr.bf16.mxu1 %v427_v12  ;;  %v425_v19 = vld [vmem:[#allocation2 + $0x20] ss:$8 sps:$4 sm:$0xff]  }
  0x30   :  { %v318_v26 = vld [vmem:[%s580_s2] ss:$0 sm:$0xff]  ;;  %s512_s2 = smov [#allocation7]  }
  0x31   :  { %348 = vmatpush3.bf16.msra.mxu0 %v411_v5  ;;  %393 = vmatpush3.bf16.msra.mxu1 %v411_v5  ;;  %s305_s13 = sshll.u32 %s512_s2, 4  ;;  %s306_s13 = int_to_ptr.vmem [resolvable:$true] %s305_s13 }
  0x32   :  { %349 = vmatprep.subr.bf16.mxu0 %v412_v6  ;;  %386 = vmatprep.subr.bf16.mxu1 %v412_v6  ;;  %s478_s14 = scalar_lea.vmem %s306_s13, 1024  ;;  %p483_p3 = scmp.lt.s32.totalorder %s306_s13, %s306_s13 }
  0x33   :  { %p479_p2 = scmp.ne.s32.totalorder %s306_s13, %s478_s14  ;;  %p484_p4 = scmp.lt.s32.totalorder %s478_s14, %s478_s14 }
  0x35   :  { %350 = vmatpush3.bf16.msra.mxu0 %v413_v7  ;;  %394 = vmatpush3.bf16.msra.mxu1 %v413_v7  ;;  %p485_p5 = por %p484_p4, %p483_p3 }
  0x36   :  { %351 = vmatprep.subr.bf16.mxu0 %v414_v8  ;;  %387 = vmatprep.subr.bf16.mxu1 %v414_v8 }
  0x37   :  { %p486_p6 = pnand %p485_p5, %p479_p2 }
  0x39   :  { %352 = vmatpush3.bf16.msra.mxu0 %v415_v9  ;;  %395 = vmatpush3.bf16.msra.mxu1 %v415_v9 }
  0x3a   :  { %353 = vmatprep.subr.bf16.mxu0 %v416_v10  ;;  %388 = vmatprep.subr.bf16.mxu1 %v416_v10 }
  0x3d   :  { %354 = vmatpush3.bf16.msra.mxu0 %v417_v13  ;;  %396 = vmatpush3.bf16.msra.mxu1 %v417_v13 }
  0x3e   :  { %355 = vmatprep.subr.bf16.mxu0 %v418_v14  ;;  %389 = vmatprep.subr.bf16.mxu1 %v418_v14 }
  0x41   :  { %356 = vmatpush3.bf16.msra.mxu0 %v419_v15  ;;  %397 = vmatpush3.bf16.msra.mxu1 %v419_v15 }
  0x42   :  { %357 = vmatprep.subr.bf16.mxu0 %v420_v16  ;;  %390 = vmatprep.subr.bf16.mxu1 %v420_v16 }
  0x45   :  { %358 = vmatpush3.bf16.msra.mxu0 %v421_v17  ;;  %398 = vmatpush3.bf16.msra.mxu1 %v421_v17 }
  0x48   :  { %260 = vmatmul.mubr.bf16.vlgmr.msra.gmra.mrb[0].mxu0 %v422_v18  ;;  %276 = vmatmul.mubr.bf16.vlgmr.msra.gmra.mrb[0].mxu1 %v425_v19 }
  0x49   :  { %267 = vmatprep.mubr.bf16.mxu0 %v428_v20  ;;  %283 = vmatprep.mubr.bf16.mxu1 %v430_v21 }
  0x50   :  { %268 = vmatmul.mubr.bf16.gmra.mrb[4].mxu0 %v432_v22  ;;  %284 = vmatmul.mubr.bf16.gmra.mrb[4].mxu1 %v433_v23 }
 0x11b   :  { %v359_v24 = vpop.f32.mrb[0].mxu0  ;;  %v371_v25 = vpop.f32.mrb[0].mxu1 }
 0x11c   :  { %v360_v27 = vpop.f32.mrb[1].mxu0  ;;  %v372_v28 = vpop.f32.mrb[1].mxu1 }
 0x11d   :  { %v361_v29 = vadd.f32 %v360_v27, %v359_v24  ;;  %v373_v30 = vadd.f32 %v372_v28, %v371_v25  ;;  %v362_v31 = vpop.f32.mrb[2].mxu0  ;;  %v374_v32 = vpop.f32.mrb[2].mxu1 }
 0x11e   :  { %v363_v33 = vpop.f32.mrb[3].mxu0  ;;  %v375_v34 = vpop.f32.mrb[3].mxu1 }
 0x11f   :  { %v262_v35 = vadd.f32 %v361_v29, %v318_v26  ;;  %v278_v36 = vadd.f32 %v373_v30, %v318_v26  ;;  %v364_v37 = vadd.f32 %v363_v33, %v362_v31  ;;  %v376_v38 = vadd.f32 %v375_v34, %v374_v32 }
 0x121   :  { %292 = vst [vmem:[#allocation7] sm:$0xff] %v262_v35  ;;  %296 = vst [vmem:[#allocation7 + $0x20] sm:$0xff] %v278_v36  ;;  %v265_v39 = vadd.f32 %v364_v37, %v318_v26  ;;  %v281_v40 = vadd.f32 %v376_v38, %v318_v26 }
 0x123   :  { %293 = vst [vmem:[#allocation7 + $0x8] sm:$0xff] %v265_v39  ;;  %297 = vst [vmem:[#allocation7 + $0x28] sm:$0xff] %v281_v40  ;;  %v365_v41 = vpop.f32.mrb[4].mxu0  ;;  %v377_v42 = vpop.f32.mrb[4].mxu1 }
 0x124   :  { %v366_v43 = vpop.f32.mrb[5].mxu0  ;;  %v378_v44 = vpop.f32.mrb[5].mxu1 }
 0x125   :  { %v367_v45 = vadd.f32 %v366_v43, %v365_v41  ;;  %v379_v46 = vadd.f32 %v378_v44, %v377_v42  ;;  %v368_v47 = vpop.f32.mrb[6].mxu0  ;;  %v380_v48 = vpop.f32.mrb[6].mxu1 }
 0x126   :  { %v369_v49 = vpop.f32.mrb[7].mxu0  ;;  %v381_v50 = vpop.f32.mrb[7].mxu1 }
 0x127   :  { %v270_v51 = vadd.f32 %v367_v45, %v318_v26  ;;  %v286_v52 = vadd.f32 %v379_v46, %v318_v26  ;;  %v370_v53 = vadd.f32 %v369_v49, %v368_v47  ;;  %v382_v54 = vadd.f32 %v381_v50, %v380_v48 }
 0x129   :  { %294 = vst [vmem:[#allocation7 + $0x10] sm:$0xff] %v270_v51  ;;  %298 = vst [vmem:[#allocation7 + $0x30] sm:$0xff] %v286_v52  ;;  %v273_v55 = vadd.f32 %v370_v53, %v318_v26  ;;  %v289_v56 = vadd.f32 %v382_v54, %v318_v26 }
 0x12b   :  { %295 = vst [vmem:[#allocation7 + $0x18] sm:$0xff] %v273_v55  ;;  %299 = vst [vmem:[#allocation7 + $0x38] sm:$0xff] %v289_v56 }
 0x12c   :  { %489 = shalt.err (!%p486_p6)
}
 0x12d   :  { %s490_s17 = scalar_lea.hbm %s581_s3, 1024 }
 0x12e   :  { %p491_p7 = scmp.ne.s32.totalorder %s581_s3, %s490_s17  ;;  %p494_p8 = scmp.lt.u32.totalorder %s490_s17, %s581_s3 }
 0x130   :  { %p496_p9 = pnand %p494_p8, %p491_p7 }
 0x132   :  { %499 = shalt.err (!%p496_p9)
}
 0x133   :  { %311 = dma.vmem_to_hbm [thread:$0]  %s306_s13, 1024, %s581_s3, [#allocation4], %s507_s22, %s507_s22, %s508_s23  }
 0x134   :  { %504 = dma.done.wait [#allocation4], 1024  }
 0x135   :  { %505 = vsyncadd [#allocation4], 4294966272 }
 0x136   :  { %315 = vsyncpa [#allocation3], 1 }
 0x137   :  { %316 = vsyncpa [#allocation6], 1 }
 0x138   :  { %317 = vsyncpa [#allocation4], 1 }

</bundles_post_ra>
